<compile_context>
chip_gen: v7x
topology: tpu7x:2x2x1
jax: 0.10.0
libtpu: 0.0.40
codegen_flags: <defaults>
</compile_context>

<pallas_src>
import jax
import jax.numpy as jnp
import numpy as np
from jax.experimental import pallas as pl
from jax.experimental.pallas import tpu as pltpu


_K2V = np.array(
    [[0.0, 0.0], [-1.0, 0.0], [1.0, 0.0], [0.0, 1.0], [0.0, -1.0],
     [-1.0, 1.0], [-1.0, -1.0], [1.0, 1.0], [1.0, -1.0]], dtype=np.float32)

_GROUP = 8                   # batch rows packed per block row
_LANES_IN = 9 * _GROUP       # 72 input lanes per block row
_LANES_OUT = 2 * _GROUP      # 16 output lanes per block row
_CHUNK_ROWS = 2048           # in-kernel compute chunk (bounds intermediates)


def _build_constants():
    """Block-diagonal contraction matrices.

    c_num[g*9+k, g*2+c] = keys2vector[k, c]
    c_den[g*9+k, g*2+c] = 1.0
    so that  x2d @ c_num -> interleaved [x0,y0,...,x7,y7] numerators and
             x2d @ c_den -> [d0,d0,...,d7,d7] denominators (same lanes).
    """
    c_num = np.zeros((_LANES_IN, _LANES_OUT), np.float32)
    c_den = np.zeros((_LANES_IN, _LANES_OUT), np.float32)
    for g in range(_GROUP):
        c_num[g * 9:(g + 1) * 9, g * 2:(g + 1) * 2] = _K2V
        c_den[g * 9:(g + 1) * 9, g * 2:(g + 1) * 2] = 1.0
    return jnp.asarray(c_num), jnp.asarray(c_den)


def _keyboard2controller_kernel(x_ref, cn_ref, cd_ref, o_ref):
    # x_ref: [TG, 72]  (8 batch rows per block row, keys minor)
    # o_ref: [TG, 16]  (interleaved x/y controller outputs for those 8 rows)
    cn = cn_ref[...]
    cd = cd_ref[...]
    tg = x_ref.shape[0]
    for start in range(0, tg, _CHUNK_ROWS):
        stop = min(start + _CHUNK_ROWS, tg)
        xb = x_ref[start:stop, :]
        num = jnp.dot(xb, cn, precision=jax.lax.Precision.HIGHEST,
                      preferred_element_type=jnp.float32)
        den = jnp.dot(xb, cd, precision=jax.lax.Precision.HIGHEST,
                      preferred_element_type=jnp.float32)
        inv = pl.reciprocal(den, approx=True)       # EUP slot (free-ish)
        inv = inv * (2.0 - den * inv)               # one Newton step (VPU)
        o_ref[start:stop, :] = num * inv


def keyboard2controller(x, *, max_rows_per_tile=8192):
    """x: [B, 9] float key probabilities -> [B, 2] float32 controller output."""
    B, K = x.shape
    assert K == 9
    x = x.astype(jnp.float32)

    max_rows_per_tile = max(8, (max_rows_per_tile // 8) * 8)
    rows = -(-B // _GROUP)                        # block rows needed
    if rows <= max_rows_per_tile:
        tg = -(-rows // 8) * 8                    # single sublane-aligned tile
        n_rows = tg
    else:
        tg = max_rows_per_tile
        n_rows = -(-rows // tg) * tg
    grid = n_rows // tg
    b_pad = n_rows * _GROUP

    if b_pad != B:
        # Padded rows get 1.0 so their denominator is 9 (no inf/NaN anywhere).
        # This pad is one HBM copy; batches already aligned to 8*tg skip it.
        x = jnp.pad(x, ((0, b_pad - B), (0, 0)), constant_values=1.0)

    x2d = x.reshape(n_rows, _LANES_IN)            # contiguous reshape: free
    c_num, c_den = _build_constants()

    out2d = pl.pallas_call(
        _keyboard2controller_kernel,
        out_shape=jax.ShapeDtypeStruct((n_rows, _LANES_OUT), jnp.float32),
        grid_spec=pltpu.PrefetchScalarGridSpec(
            num_scalar_prefetch=0,
            grid=(grid,),
            in_specs=[
                pl.BlockSpec((tg, _LANES_IN), lambda i: (i, 0)),
                pl.BlockSpec((_LANES_IN, _LANES_OUT), lambda i: (0, 0)),
                pl.BlockSpec((_LANES_IN, _LANES_OUT), lambda i: (0, 0)),
            ],
            out_specs=pl.BlockSpec((tg, _LANES_OUT), lambda i: (i, 0)),
        ),
        compiler_params=pltpu.CompilerParams(
            dimension_semantics=("parallel",),
            vmem_limit_bytes=48 * 1024 * 1024,
        ),
        cost_estimate=pl.CostEstimate(
            flops=17 * b_pad, transcendentals=b_pad, bytes_accessed=44 * b_pad),
    )(x2d, c_num, c_den)

    out = out2d.reshape(b_pad, 2)                 # contiguous reshape: free
    return out[:B] if b_pad != B else out


if __name__ == "__main__":
    k2v = jnp.asarray(_K2V)

    def reference(x):
        x = x.astype(jnp.float32)
        num = jnp.sum(x[:, :, None] * k2v[None, :, :], axis=1)  # exact f32
        return num / jnp.sum(x, axis=-1, keepdims=True)

    # Small batch consistent with the module (rows of 9 key probabilities).
    x_small = jax.random.uniform(jax.random.PRNGKey(0), (8, 9), jnp.float32,
                                 minval=0.05, maxval=1.0)
    out_small = jax.block_until_ready(keyboard2controller(x_small))
    assert out_small.shape == (8, 2)
    assert jnp.allclose(out_small, reference(x_small), atol=1e-5, rtol=1e-5)

    # Unaligned batch (exercises the pad-with-ones path).
    x_un = jax.random.uniform(jax.random.PRNGKey(1), (13, 9), jnp.float32,
                              minval=0.05, maxval=1.0)
    out_un = jax.block_until_ready(keyboard2controller(x_un))
    assert out_un.shape == (13, 2)
    assert jnp.allclose(out_un, reference(x_un), atol=1e-5, rtol=1e-5)

    # Larger batch: once with a small tile override (multi-step grid path)
    # and once with the default large-tile configuration.
    x_big = jax.random.uniform(jax.random.PRNGKey(2), (1200, 9), jnp.float32,
                               minval=0.05, maxval=1.0)
    out_multi = jax.block_until_ready(
        keyboard2controller(x_big, max_rows_per_tile=64))
    out_deflt = jax.block_until_ready(keyboard2controller(x_big))
    ref_big = reference(x_big)
    assert out_multi.shape == (1200, 2)
    assert jnp.allclose(out_multi, ref_big, atol=1e-5, rtol=1e-5)
    assert jnp.allclose(out_deflt, ref_big, atol=1e-5, rtol=1e-5)

    print("KERNEL_OK")
</pallas_src>

<mosaic_0001>
module attributes {stable_mosaic.version = 11 : i64} {
  func.func @_keyboard2controller_kernel(%arg0: i32, %arg1: memref<8x72xf32, #tpu.memory_space<vmem>>, %arg2: memref<72x16xf32, #tpu.memory_space<vmem>>, %arg3: memref<72x16xf32, #tpu.memory_space<vmem>>, %arg4: memref<8x16xf32, #tpu.memory_space<vmem>>) attributes {dimension_semantics = [#tpu.dimension_semantics<parallel>], iteration_bounds = array<i64: 1>, scalar_prefetch = 0 : i64, scratch_operands = 0 : i64, tpu.core_type = #tpu.core_type<tc>, window_params = [{transform_indices = @transform_0, window_bounds = array<i64: 8, 72>}, {pipeline_mode = #tpu.pipeline_mode<synchronous>, transform_indices = @transform_1, window_bounds = array<i64: 72, 16>}, {pipeline_mode = #tpu.pipeline_mode<synchronous>, transform_indices = @transform_2, window_bounds = array<i64: 72, 16>}, {transform_indices = @transform_3, window_bounds = array<i64: 8, 16>}]} {
    %c0 = arith.constant 0 : index
    %c0_0 = arith.constant 0 : index
    %0 = vector.load %arg2[%c0, %c0_0] : memref<72x16xf32, #tpu.memory_space<vmem>>, vector<72x16xf32>
    %c0_1 = arith.constant 0 : index
    %c0_2 = arith.constant 0 : index
    %1 = vector.load %arg3[%c0_1, %c0_2] : memref<72x16xf32, #tpu.memory_space<vmem>>, vector<72x16xf32>
    %c0_3 = arith.constant 0 : index
    %c0_4 = arith.constant 0 : index
    %2 = vector.load %arg1[%c0_3, %c0_4] : memref<8x72xf32, #tpu.memory_space<vmem>>, vector<8x72xf32>
    %cst = arith.constant dense<0.000000e+00> : vector<8x16xf32>
    %3 = tpu.matmul %2, %0, %cst {dimension_numbers = #tpu.dot_dimension_numbers<[1], [0], [0], [1], [0, 0, 1, 1], [], []>, precision = #tpu.contract_precision<fp32>} : vector<8x72xf32>, vector<72x16xf32>, vector<8x16xf32> -> vector<8x16xf32>
    %cst_5 = arith.constant dense<0.000000e+00> : vector<8x16xf32>
    %4 = tpu.matmul %2, %1, %cst_5 {dimension_numbers = #tpu.dot_dimension_numbers<[1], [0], [0], [1], [0, 0, 1, 1], [], []>, precision = #tpu.contract_precision<fp32>} : vector<8x72xf32>, vector<72x16xf32>, vector<8x16xf32> -> vector<8x16xf32>
    %5 = tpu.reciprocal %4 {approx = true} : vector<8x16xf32> -> vector<8x16xf32>
    %6 = arith.mulf %4, %5 : vector<8x16xf32>
    %cst_6 = arith.constant 2.000000e+00 : f32
    %7 = vector.broadcast %cst_6 : f32 to vector<8x16xf32>
    %8 = arith.subf %7, %6 : vector<8x16xf32>
    %9 = arith.mulf %5, %8 : vector<8x16xf32>
    %10 = arith.mulf %3, %9 : vector<8x16xf32>
    %c0_7 = arith.constant 0 : index
    %c0_8 = arith.constant 0 : index
    %11 = vector.load %arg4[%c0_7, %c0_8] : memref<8x16xf32, #tpu.memory_space<vmem>>, vector<8x16xf32>
    tpu.vector_store %arg4[%c0_7, %c0_8], %10 {strides = array<i32>} : memref<8x16xf32, #tpu.memory_space<vmem>>, vector<8x16xf32>,
    return
  }
  func.func @transform_0(%arg0: i32) -> (i32, i32) {
    %c0_i32 = arith.constant 0 : i32
    %c0_i32_0 = arith.constant 0 : i32
    return %arg0, %c0_i32 : i32, i32
  }
  func.func @transform_1(%arg0: i32) -> (i32, i32) {
    %c0_i32 = arith.constant 0 : i32
    %c0_i32_0 = arith.constant 0 : i32
    %c0_i32_1 = arith.constant 0 : i32
    return %c0_i32, %c0_i32_0 : i32, i32
  }
  func.func @transform_2(%arg0: i32) -> (i32, i32) {
    %c0_i32 = arith.constant 0 : i32
    %c0_i32_0 = arith.constant 0 : i32
    %c0_i32_1 = arith.constant 0 : i32
    return %c0_i32, %c0_i32_0 : i32, i32
  }
  func.func @transform_3(%arg0: i32) -> (i32, i32) {
    %c0_i32 = arith.constant 0 : i32
    %c0_i32_0 = arith.constant 0 : i32
    return %arg0, %c0_i32 : i32, i32
  }
}

</mosaic_0001>

<bundles_post_ra>
// kernel: tpu_custom_call.1
= control target key start
LH: loop header
LB: loop body
LE: loop exit
PB: predicated region body
PF: predicated region fallthrough
CT: control target
= control target key end

     0   :  { %v1725_v3 = vmov 0.0|0.0   ;;  %vm1726_vm0 = vmmov 0   ;;  %v1727_v16 = vmov 0.0   ;;  %s2136_s0 = inlined_call_operand.vmem [shape: f32[8,72], index: 0, kind: input, shape index: {}]   ;;  %s2137_s1 = inlined_call_operand.vmem [shape: f32[72,16], index: 1, kind: input, shape index: {}]   ;;  %s2138_s2 = inlined_call_operand.vmem [shape: f32[72,16], index: 2, kind: input, shape index: {}]   ;;  %s2139_s3 = inlined_call_operand.hbm [shape: f32[8,16], index: 3, kind: output, shape index: {}]  }
   0x1   :  { %v15_v0 = vld [vmem:[%s2137_s1] sm:$0xff]  ;;  %v16_v1 = vld [vmem:[%s2137_s1 + $0x8] sm:$0xff]  ;;  %1531 = vmatprep.subr.bf16.mxu0 %v1725_v3  ;;  %1603 = vmatprep.subr.bf16.mxu1 %v1725_v3  ;;  %v17_v8 = vld [vmem:[%s2137_s1 + $0x10] sm:$0xff] }
   0x2   :  { %v24_v2 = vld [vmem:[%s2138_s2] sm:$0xff]  ;;  %v39_v4 = vand.u32 4294901760, %v15_v0  ;;  %v42_v5 = vand.u32 4294901760, %v16_v1  ;;  %v25_v6 = vld [vmem:[%s2138_s2 + $0x8] sm:$0xff]  ;;  %v18_v9 = vld [vmem:[%s2137_s1 + $0x18] sm:$0xff]  ;;  %v45_v11 = vand.u32 4294901760, %v17_v8  ;;  %1297 = vmatprep.mubr.msk.f32.mxu0 %vm1726_vm0, %v1727_v16  ;;  %1423 = vmatprep.mubr.msk.f32.mxu1 %vm1726_vm0, %v1727_v16 }
   0x3   :  { %v589_v7 = vand.u32 4294901760, %v24_v2  ;;  %v592_v10 = vand.u32 4294901760, %v25_v6  ;;  %v48_v12 = vand.u32 4294901760, %v18_v9  ;;  %v26_v13 = vld [vmem:[%s2138_s2 + $0x10] sm:$0xff]  ;;  %v27_v14 = vld [vmem:[%s2138_s2 + $0x18] sm:$0xff]  ;;  %v19_v15 = vld [vmem:[%s2137_s1 + $0x20] sm:$0xff] }
   0x4   :  { %v1782_v17 = vpack.c.bf16 %v42_v5, %v39_v4  ;;  %v1784_v18 = vsub.f32 %v15_v0, %v39_v4  ;;  %v1786_v19 = vsub.f32 %v16_v1, %v42_v5  ;;  %v20_v21 = vld [vmem:[%s2137_s1 + $0x28] sm:$0xff]  ;;  %v28_v22 = vld [vmem:[%s2138_s2 + $0x20] sm:$0xff]  ;;  %v1805_v27 = vsub.f32 %v17_v8, %v45_v11  ;;  %v21_v28 = vld [vmem:[%s2137_s1 + $0x30] sm:$0xff] }
   0x5   :  { %v1788_v20 = vsub.f32 %v24_v2, %v589_v7  ;;  %v29_v23 = vld [vmem:[%s2138_s2 + $0x28] sm:$0xff]  ;;  %v1799_v24 = vpack.c.bf16 %v592_v10, %v589_v7  ;;  %v1801_v25 = vsub.f32 %v25_v6, %v592_v10  ;;  %v1803_v26 = vpack.c.bf16 %v48_v12, %v45_v11  ;;  %v22_v33 = vld [vmem:[%s2137_s1 + $0x38] sm:$0xff]  ;;  %v30_v38 = vld [vmem:[%s2138_s2 + $0x30] sm:$0xff] }
   0x6   :  { %1533 = vmatpush3.bf16.msra.mxu0 %v1782_v17  ;;  %v1811_v29 = vsub.f32 %v18_v9, %v48_v12  ;;  %v595_v30 = vand.u32 4294901760, %v26_v13  ;;  %v598_v31 = vand.u32 4294901760, %v27_v14  ;;  %v51_v32 = vand.u32 4294901760, %v19_v15  ;;  %v31_v39 = vld [vmem:[%s2138_s2 + $0x38] sm:$0xff]  ;;  %v23_v44 = vld [vmem:[%s2137_s1 + $0x40] sm:$0xff] }
   0x7   :  { %1605 = vmatpush3.bf16.msra.mxu1 %v1799_v24  ;;  %1534 = vmatprep.subr.bf16.mxu0 %v1725_v3  ;;  %v54_v34 = vand.u32 4294901760, %v20_v21  ;;  %v601_v35 = vand.u32 4294901760, %v28_v22  ;;  %v604_v36 = vand.u32 4294901760, %v29_v23  ;;  %v57_v37 = vand.u32 4294901760, %v21_v28  ;;  %v32_v45 = vld [vmem:[%s2138_s2 + $0x40] sm:$0xff] }
   0x8   :  { %1606 = vmatprep.subr.bf16.mxu1 %v1725_v3  ;;  %v1825_v40 = vpack.c.bf16 %v598_v31, %v595_v30  ;;  %v1827_v41 = vsub.f32 %v26_v13, %v595_v30  ;;  %v1829_v42 = vsub.f32 %v27_v14, %v598_v31  ;;  %v1831_v43 = vsub.f32 %v19_v15, %v51_v32 }
   0x9   :  { %8 = vsyncpa [#allocation3], 0  ;;  %v1839_v46 = vpack.c.bf16 %v54_v34, %v51_v32  ;;  %v1841_v47 = vsub.f32 %v20_v21, %v54_v34  ;;  %v1843_v48 = vpack.c.bf16 %v604_v36, %v601_v35  ;;  %v1845_v49 = vsub.f32 %v28_v22, %v601_v35  ;;  %v33_v50 = vld [vmem:[%s2136_s0] sm:$0xff]  ;;  %s1728_s0 = smov [#allocation2]  }
   0xa   :  { %1536 = vmatpush3.bf16.msra.mxu0 %v1803_v26  ;;  %v1851_v51 = vsub.f32 %v29_v23, %v604_v36  ;;  %v60_v52 = vand.u32 4294901760, %v22_v33  ;;  %v1853_v53 = vsub.f32 %v21_v28, %v57_v37  ;;  %v607_v54 = vand.u32 4294901760, %v30_v38  ;;  %s1151_s1 = sshll.u32 %s1728_s0, 4  ;;  %s1152_s1 = int_to_ptr.vmem [resolvable:$true] %s1151_s1 }
   0xb   :  { %1608 = vmatpush3.bf16.msra.mxu1 %v1825_v40  ;;  %1537 = vmatprep.subr.bf16.mxu0 %v1725_v3  ;;  %v610_v55 = vand.u32 4294901760, %v31_v39  ;;  %v1857_v56 = vand.u32 4294901760, %v23_v44  ;;  %v1859_v57 = vand.u32 4294901760, %v32_v45  ;;  %vm34_vm1 = vcmask 588800   ;;  %s1701_s2 = scalar_lea.vmem %s1152_s1, 128  ;;  %p1706_p1 = scmp.lt.s32.totalorder %s1152_s1, %s1152_s1 }
   0xc   :  { %1609 = vmatprep.subr.bf16.mxu1 %v1725_v3  ;;  %v1862_v58 = vpack.c.bf16 %v60_v52, %v57_v37  ;;  %v1864_v59 = vsub.f32 %v22_v33, %v60_v52  ;;  %v1866_v60 = vsub.f32 %v30_v38, %v607_v54  ;;  %v36_v61 = vsel %vm34_vm1, %v33_v50, 0  ;;  %p1702_p0 = scmp.ne.s32.totalorder %s1152_s1, %s1701_s2  ;;  %p1707_p2 = scmp.lt.s32.totalorder %s1701_s2, %s1701_s2 }
   0xd   :  { %v1868_v62 = vpack.c.bf16 %v610_v55, %v607_v54  ;;  %v1870_v63 = vsub.f32 %v31_v39, %v610_v55  ;;  %v1873_v0 = vsub.f32 %v23_v44, %v1857_v56  ;;  %v1876_v1 = vsub.f32 %v32_v45, %v1859_v57 }
   0xe   :  { %1539 = vmatpush3.bf16.msra.mxu0 %v1839_v46  ;;  %v1879_v2 = vand.u32 4294901760, %v36_v61  ;;  %v125_v4 = vand.u32 4294901760, %v1784_v18  ;;  %v132_v5 = vand.u32 4294901760, %v1786_v19  ;;  %v675_v6 = vand.u32 4294901760, %v1788_v20  ;;  %p1708_p3 = por %p1707_p2, %p1706_p1 }
   0xf   :  { %1611 = vmatpush3.bf16.msra.mxu1 %v1843_v48  ;;  %1540 = vmatprep.subr.bf16.mxu0 %v1725_v3  ;;  %v682_v7 = vand.u32 4294901760, %v1801_v25  ;;  %v139_v8 = vand.u32 4294901760, %v1805_v27  ;;  %v146_v9 = vand.u32 4294901760, %v1811_v29  ;;  %v689_v10 = vand.u32 4294901760, %v1827_v41 }
  0x10   :  { %1612 = vmatprep.subr.bf16.mxu1 %v1725_v3  ;;  %v1892_v11 = vsub.f32 %v36_v61, %v1879_v2  ;;  %v126_v12 = vsub.f32 %v1784_v18, %v125_v4  ;;  %v133_v13 = vsub.f32 %v1786_v19, %v132_v5  ;;  %v676_v14 = vsub.f32 %v1788_v20, %v675_v6  ;;  %p1709_p4 = pnand %p1708_p3, %p1702_p0 }
  0x11   :  { %v683_v15 = vsub.f32 %v1801_v25, %v682_v7  ;;  %v140_v21 = vsub.f32 %v1805_v27, %v139_v8  ;;  %v147_v22 = vsub.f32 %v1811_v29, %v146_v9  ;;  %v690_v23 = vsub.f32 %v1827_v41, %v689_v10 }
  0x12   :  { %1542 = vmatpush3.bf16.msra.mxu0 %v1862_v58  ;;  %v1917_v28 = vand.u32 4294901760, %v1892_v11  ;;  %v127_v30 = vand.u32 4294901760, %v126_v12  ;;  %v134_v31 = vand.u32 4294901760, %v133_v13  ;;  %v677_v32 = vand.u32 4294901760, %v676_v14 }
  0x13   :  { %1614 = vmatpush3.bf16.msra.mxu1 %v1868_v62  ;;  %1295 = vmatprep.subr.mxu0 %v1727_v16  ;;  %v684_v33 = vand.u32 4294901760, %v683_v15  ;;  %v141_v34 = vand.u32 4294901760, %v140_v21  ;;  %v148_v35 = vand.u32 4294901760, %v147_v22  ;;  %v691_v36 = vand.u32 4294901760, %v690_v23 }
  0x14   :  { %1421 = vmatprep.subr.mxu1 %v1727_v16  ;;  %v115_v37 = vsub.f32 %v1892_v11, %v1917_v28  ;;  %v1544_v38 = vpack.c.bf16 %v134_v31, %v127_v30  ;;  %v696_v39 = vand.u32 4294901760, %v1829_v42  ;;  %v153_v44 = vand.u32 4294901760, %v1831_v43 }
  0x15   :  { %v1616_v45 = vpack.c.bf16 %v684_v33, %v677_v32  ;;  %v1547_v50 = vpack.c.bf16 %v148_v35, %v141_v34  ;;  %v160_v52 = vand.u32 4294901760, %v1841_v47  ;;  %v703_v54 = vand.u32 4294901760, %v1845_v49 }
  0x16   :  { %1296 = vmatpush3.msra.mxu0 %v1857_v56  ;;  %v116_v55 = vand.u32 4294901760, %v115_v37  ;;  %v697_v61 = vsub.f32 %v1829_v42, %v696_v39  ;;  %v154_v12 = vsub.f32 %v1831_v43, %v153_v44  ;;  %v710_v13 = vand.u32 4294901760, %v1851_v51 }
  0x17   :  { %1422 = vmatpush3.msra.mxu1 %v1859_v57  ;;  %1543 = vmatprep.subr.bf16.mxu0 %v1725_v3  ;;  %v161_v14 = vsub.f32 %v1841_v47, %v160_v52  ;;  %v704_v15 = vsub.f32 %v1845_v49, %v703_v54  ;;  %v2142_v21 = vand.u32 4294901760, %v1853_v53  ;;  %v2141_v22 = vand.u32 4294901760, %v1864_v59 }
  0x18   :  { %1615 = vmatprep.subr.bf16.mxu1 %v1725_v3  ;;  %1298 = vmatmul.mubr.f32.vlgmr.msra.gmra.mrb[0].mxu0 %v116_v55  ;;  %v698_v23 = vand.u32 4294901760, %v697_v61  ;;  %v155_v30 = vand.u32 4294901760, %v154_v12  ;;  %v711_v31 = vsub.f32 %v1851_v51, %v710_v13  ;;  %v2140_v32 = vand.u32 4294901760, %v1866_v60 }
  0x19   :  { %1545 = vmatpush3.bf16.msra.mxu0 %v1544_v38  ;;  %1424 = vmatmul.mubr.f32.vlgmr.msra.gmra.mrb[0].mxu1 %v116_v55  ;;  %v162_v33 = vand.u32 4294901760, %v161_v14  ;;  %v705_v34 = vand.u32 4294901760, %v704_v15  ;;  %v168_v35 = vsub.f32 %v1853_v53, %v2142_v21  ;;  %v175_v37 = vsub.f32 %v1864_v59, %v2141_v22 }
  0x1a   :  { %1617 = vmatpush3.bf16.msra.mxu1 %v1616_v45  ;;  %1546 = vmatprep.subr.bf16.mxu0 %v1725_v3  ;;  %v1619_v61 = vpack.c.bf16 %v698_v23, %v691_v36  ;;  %v712_v12 = vand.u32 4294901760, %v711_v31  ;;  %v718_v38 = vsub.f32 %v1866_v60, %v2140_v32  ;;  %v2143_v55 = vand.u32 4294901760, %v1870_v63 }
  0x1b   :  { %1618 = vmatprep.subr.bf16.mxu1 %v1725_v3  ;;  %1318 = vmatprep.mubr.msk.f32.mxu0 %vm1726_vm0, %v1727_v16  ;;  %v1550_v36 = vpack.c.bf16 %v162_v33, %v155_v30  ;;  %v169_v45 = vand.u32 4294901760, %v168_v35  ;;  %v176_v15 = vand.u32 4294901760, %v175_v37  ;;  %v181_v23 = vand.u32 4294901760, %v1873_v0 }
  0x1c   :  { %v725_v14 = vsub.f32 %v1870_v63, %v2143_v55  ;;  %1444 = vmatprep.mubr.msk.f32.mxu1 %vm1726_vm0, %v1727_v16  ;;  %v1622_v31 = vpack.c.bf16 %v712_v12, %v705_v34  ;;  %v719_v32 = vand.u32 4294901760, %v718_v38  ;;  %v731_v21 = vand.u32 4294901760, %v1876_v1 }
  0x1d   :  { %1548 = vmatpush3.bf16.msra.mxu0 %v1547_v50  ;;  %v1553_v55 = vpack.c.bf16 %v176_v15, %v169_v45  ;;  %v182_v50 = vsub.f32 %v1873_v0, %v181_v23  ;;  %v1556_v37 = vpack.c.bf16 %v1786_v19, %v1784_v18  ;;  %v1562_v12 = vpack.c.bf16 %v1841_v47, %v1831_v43 }
  0x1e   :  { %1620 = vmatpush3.bf16.msra.mxu1 %v1619_v61  ;;  %1549 = vmatprep.subr.bf16.mxu0 %v1725_v3  ;;  %v726_v22 = vand.u32 4294901760, %v725_v14  ;;  %v732_v33 = vsub.f32 %v1876_v1, %v731_v21  ;;  %v1631_v61 = vpack.c.bf16 %v1829_v42, %v1827_v41  ;;  %v1634_v38 = vpack.c.bf16 %v1851_v51, %v1845_v49 }
  0x1f   :  { %1621 = vmatprep.subr.bf16.mxu1 %v1725_v3  ;;  %v183_v34 = vand.u32 4294901760, %v182_v50  ;;  %v1637_v14 = vpack.c.bf16 %v1870_v63, %v1866_v60  ;;  %v1583_v18 = vpack.c.bf16 %v146_v9, %v139_v8  ;;  %v1655_v19 = vpack.c.bf16 %v696_v39, %v689_v10 }
  0x20   :  { %v1625_v30 = vpack.c.bf16 %v726_v22, %v719_v32  ;;  %v733_v35 = vand.u32 4294901760, %v732_v33  ;;  %v1628_v22 = vpack.c.bf16 %v1801_v25, %v1788_v20  ;;  %v1559_v32 = vpack.c.bf16 %v1811_v29, %v1805_v27 }
  0x21   :  { %1551 = vmatpush3.bf16.msra.mxu0 %v1550_v36  ;;  %v1652_v36 = vpack.c.bf16 %v682_v7, %v675_v6  ;;  %v1586_v20 = vpack.c.bf16 %v160_v52, %v153_v44  ;;  %v1658_v25 = vpack.c.bf16 %v710_v13, %v703_v54  ;;  %v2144_v27 = vand.u32 4294901760, %v1853_v53 }
  0x22   :  { %1623 = vmatpush3.bf16.msra.mxu1 %v1622_v31  ;;  %1552 = vmatprep.subr.bf16.mxu0 %v1725_v3  ;;  %v2145_v29 = vand.u32 4294901760, %v1864_v59  ;;  %v2146_v42 = vand.u32 4294901760, %v1866_v60  ;;  %v2147_v43 = vand.u32 4294901760, %v1870_v63  ;;  %vm1143_vm2 = vcmask 130048  }
  0x23   :  { %1624 = vmatprep.subr.bf16.mxu1 %v1725_v3 }
  0x24   :  { %v1589_v41 = vpack.c.bf16 %v2145_v29, %v2144_v27  ;;  %v1661_v47 = vpack.c.bf16 %v2147_v43, %v2146_v42 }
  0x25   :  { %1554 = vmatpush3.bf16.msra.mxu0 %v1553_v55  ;;  %v1565_v55 = vpack.c.bf16 %v1864_v59, %v1853_v53 }
  0x26   :  { %1626 = vmatpush3.bf16.msra.mxu1 %v1625_v30  ;;  %1316 = vmatprep.subr.mxu0 %v1727_v16 }
  0x27   :  { %1442 = vmatprep.subr.mxu1 %v1727_v16 }
  0x29   :  { %1317 = vmatpush3.msra.mxu0 %v183_v34 }
  0x2a   :  { %1443 = vmatpush3.msra.mxu1 %v733_v35  ;;  %1555 = vmatprep.subr.bf16.mxu0 %v1725_v3 }
  0x2b   :  { %1627 = vmatprep.subr.bf16.mxu1 %v1725_v3  ;;  %1319 = vmatmul.mubr.f32.vlgmr.msra.gmra.mrb[0].mxu0 %v1879_v2 }
  0x2c   :  { %1557 = vmatpush3.bf16.msra.mxu0 %v1556_v37  ;;  %1445 = vmatmul.mubr.f32.vlgmr.msra.gmra.mrb[0].mxu1 %v1879_v2 }
  0x2d   :  { %1629 = vmatpush3.bf16.msra.mxu1 %v1628_v22  ;;  %1558 = vmatprep.subr.bf16.mxu0 %v1725_v3 }
  0x2e   :  { %1630 = vmatprep.subr.bf16.mxu1 %v1725_v3  ;;  %1339 = vmatprep.mubr.msk.f32.mxu0 %vm1726_vm0, %v1727_v16 }
  0x2f   :  { %1465 = vmatprep.mubr.msk.f32.mxu1 %vm1726_vm0, %v1727_v16 }
  0x30   :  { %1560 = vmatpush3.bf16.msra.mxu0 %v1559_v32 }
  0x31   :  { %1632 = vmatpush3.bf16.msra.mxu1 %v1631_v61  ;;  %1561 = vmatprep.subr.bf16.mxu0 %v1725_v3 }
  0x32   :  { %1633 = vmatprep.subr.bf16.mxu1 %v1725_v3 }
  0x34   :  { %1563 = vmatpush3.bf16.msra.mxu0 %v1562_v12 }
  0x35   :  { %1635 = vmatpush3.bf16.msra.mxu1 %v1634_v38  ;;  %1564 = vmatprep.subr.bf16.mxu0 %v1725_v3 }
  0x36   :  { %1636 = vmatprep.subr.bf16.mxu1 %v1725_v3 }
  0x38   :  { %1566 = vmatpush3.bf16.msra.mxu0 %v1565_v55 }
  0x39   :  { %1638 = vmatpush3.bf16.msra.mxu1 %v1637_v14  ;;  %1337 = vmatprep.subr.mxu0 %v1727_v16 }
  0x3a   :  { %1463 = vmatprep.subr.mxu1 %v1727_v16 }
  0x3c   :  { %1338 = vmatpush3.msra.mxu0 %v1873_v0 }
  0x3d   :  { %1464 = vmatpush3.msra.mxu1 %v1876_v1  ;;  %1567 = vmatprep.subr.bf16.mxu0 %v1725_v3 }
  0x3e   :  { %1639 = vmatprep.subr.bf16.mxu1 %v1725_v3  ;;  %1340 = vmatmul.mubr.f32.vlgmr.msra.gmra.mrb[0].mxu0 %v1892_v11 }
  0x3f   :  { %1569 = vmatpush3.bf16.msra.mxu0 %v1782_v17  ;;  %1466 = vmatmul.mubr.f32.vlgmr.msra.gmra.mrb[0].mxu1 %v1892_v11  ;;  %v1580_v11 = vpack.c.bf16 %v132_v5, %v125_v4 }
  0x40   :  { %1641 = vmatpush3.bf16.msra.mxu1 %v1799_v24  ;;  %1570 = vmatprep.subr.bf16.mxu0 %v1725_v3 }
  0x41   :  { %1642 = vmatprep.subr.bf16.mxu1 %v1725_v3  ;;  %1360 = vmatprep.mubr.msk.f32.mxu0 %vm1726_vm0, %v1727_v16 }
  0x42   :  { %1486 = vmatprep.mubr.msk.f32.mxu1 %vm1726_vm0, %v1727_v16 }
  0x43   :  { %1572 = vmatpush3.bf16.msra.mxu0 %v1803_v26 }
  0x44   :  { %1644 = vmatpush3.bf16.msra.mxu1 %v1825_v40  ;;  %1573 = vmatprep.subr.bf16.mxu0 %v1725_v3 }
  0x45   :  { %1645 = vmatprep.subr.bf16.mxu1 %v1725_v3 }
  0x47   :  { %1575 = vmatpush3.bf16.msra.mxu0 %v1839_v46 }
  0x48   :  { %1647 = vmatpush3.bf16.msra.mxu1 %v1843_v48  ;;  %1576 = vmatprep.subr.bf16.mxu0 %v1725_v3 }
  0x49   :  { %1648 = vmatprep.subr.bf16.mxu1 %v1725_v3 }
  0x4b   :  { %1578 = vmatpush3.bf16.msra.mxu0 %v1862_v58 }
  0x4c   :  { %1650 = vmatpush3.bf16.msra.mxu1 %v1868_v62  ;;  %1358 = vmatprep.subr.mxu0 %v1727_v16 }
  0x4d   :  { %1484 = vmatprep.subr.mxu1 %v1727_v16 }
  0x4f   :  { %1359 = vmatpush3.msra.mxu0 %v1857_v56 }
  0x50   :  { %1485 = vmatpush3.msra.mxu1 %v1859_v57  ;;  %1579 = vmatprep.subr.bf16.mxu0 %v1725_v3 }
  0x51   :  { %1651 = vmatprep.subr.bf16.mxu1 %v1725_v3  ;;  %1361 = vmatmul.mubr.f32.vlgmr.msra.gmra.mrb[0].mxu0 %v1917_v28 }
  0x52   :  { %1581 = vmatpush3.bf16.msra.mxu0 %v1580_v11  ;;  %1487 = vmatmul.mubr.f32.vlgmr.msra.gmra.mrb[0].mxu1 %v1917_v28 }
  0x53   :  { %1653 = vmatpush3.bf16.msra.mxu1 %v1652_v36  ;;  %1582 = vmatprep.subr.bf16.mxu0 %v1725_v3 }
  0x54   :  { %1654 = vmatprep.subr.bf16.mxu1 %v1725_v3  ;;  %1381 = vmatprep.mubr.msk.f32.mxu0 %vm1726_vm0, %v1727_v16 }
  0x55   :  { %1507 = vmatprep.mubr.msk.f32.mxu1 %vm1726_vm0, %v1727_v16 }
  0x56   :  { %1584 = vmatpush3.bf16.msra.mxu0 %v1583_v18 }
  0x57   :  { %1656 = vmatpush3.bf16.msra.mxu1 %v1655_v19  ;;  %1585 = vmatprep.subr.bf16.mxu0 %v1725_v3 }
  0x58   :  { %1657 = vmatprep.subr.bf16.mxu1 %v1725_v3 }
  0x5a   :  { %1587 = vmatpush3.bf16.msra.mxu0 %v1586_v20 }
  0x5b   :  { %1659 = vmatpush3.bf16.msra.mxu1 %v1658_v25  ;;  %1588 = vmatprep.subr.bf16.mxu0 %v1725_v3 }
  0x5c   :  { %1660 = vmatprep.subr.bf16.mxu1 %v1725_v3 }
  0x5e   :  { %1590 = vmatpush3.bf16.msra.mxu0 %v1589_v41 }
  0x5f   :  { %1662 = vmatpush3.bf16.msra.mxu1 %v1661_v47  ;;  %1379 = vmatprep.subr.mxu0 %v1727_v16 }
  0x60   :  { %1505 = vmatprep.subr.mxu1 %v1727_v16 }
  0x62   :  { %1380 = vmatpush3.msra.mxu0 %v181_v23 }
  0x63   :  { %1506 = vmatpush3.msra.mxu1 %v731_v21  ;;  %1591 = vmatprep.subr.bf16.mxu0 %v1725_v3 }
  0x64   :  { %1663 = vmatprep.subr.bf16.mxu1 %v1725_v3  ;;  %1382 = vmatmul.mubr.f32.vlgmr.msra.gmra.mrb[0].mxu0 %v1879_v2 }
  0x65   :  { %1593 = vmatpush3.bf16.msra.mxu0 %v1782_v17  ;;  %1508 = vmatmul.mubr.f32.vlgmr.msra.gmra.mrb[0].mxu1 %v1879_v2 }
  0x66   :  { %1665 = vmatpush3.bf16.msra.mxu1 %v1799_v24  ;;  %1594 = vmatprep.subr.bf16.mxu0 %v1725_v3 }
  0x67   :  { %1666 = vmatprep.subr.bf16.mxu1 %v1725_v3  ;;  %1402 = vmatprep.mubr.msk.f32.mxu0 %vm1726_vm0, %v1727_v16 }
  0x68   :  { %1528 = vmatprep.mubr.msk.f32.mxu1 %vm1726_vm0, %v1727_v16 }
  0x69   :  { %1596 = vmatpush3.bf16.msra.mxu0 %v1803_v26 }
  0x6a   :  { %1668 = vmatpush3.bf16.msra.mxu1 %v1825_v40  ;;  %1597 = vmatprep.subr.bf16.mxu0 %v1725_v3 }
  0x6b   :  { %1669 = vmatprep.subr.bf16.mxu1 %v1725_v3 }
  0x6d   :  { %1599 = vmatpush3.bf16.msra.mxu0 %v1839_v46 }
  0x6e   :  { %1671 = vmatpush3.bf16.msra.mxu1 %v1843_v48  ;;  %1600 = vmatprep.subr.bf16.mxu0 %v1725_v3 }
  0x6f   :  { %1672 = vmatprep.subr.bf16.mxu1 %v1725_v3 }
  0x71   :  { %1602 = vmatpush3.bf16.msra.mxu0 %v1862_v58 }
  0x72   :  { %1674 = vmatpush3.bf16.msra.mxu1 %v1868_v62  ;;  %1400 = vmatprep.subr.mxu0 %v1727_v16 }
  0x73   :  { %1526 = vmatprep.subr.mxu1 %v1727_v16 }
  0x75   :  { %1401 = vmatpush3.msra.mxu0 %v1857_v56 }
  0x76   :  { %1527 = vmatpush3.msra.mxu1 %v1859_v57  ;;  %1403 = vmatmul.mubr.f32.vlgmr.msra.gmra.mrb[0].mxu0 %v1879_v2 }
  0x77   :  { %1529 = vmatmul.mubr.f32.vlgmr.msra.gmra.mrb[0].mxu1 %v1879_v2 }
 0x149   :  { %v584_v17 = vpop.f32.mrb[0].mxu0 }
 0x14a   :  { %v1134_v24 = vpop.f32.mrb[0].mxu1  ;;  %v1404_v26 = vpop.f32.mrb[1].mxu0 }
 0x14b   :  { %1699 = vrcp.f32 %v1134_v24  ;;  %v1530_v3 = vpop.f32.mrb[1].mxu1 }
 0x155   :  { %v1700_v40 = vpop.eup %1699 }
 0x156   :  { %v1139_v46 = vmul.f32 %v1700_v40, %v1134_v24 }
 0x158   :  { %v1140_v48 = vsub.f32 2.0, %v1139_v46 }
 0x15a   :  { %v1141_v49 = vmul.f32 %v1700_v40, %v1140_v48 }
 0x15c   :  { %v1142_v16 = vmul.f32 %v1141_v49, %v584_v17 }
 0x15e   :  { %1144 = vst.msk [vmem:[#allocation2] sm:$0xff] %vm1143_vm2, %v1142_v16 }
 0x15f   :  { %1712 = shalt.err (!%p1709_p4)
}
 0x160   :  { %s1713_s25 = scalar_lea.hbm %s2139_s3, 128 }
 0x161   :  { %p1714_p5 = scmp.ne.s32.totalorder %s2139_s3, %s1713_s25  ;;  %p1717_p6 = scmp.lt.u32.totalorder %s1713_s25, %s2139_s3 }
 0x163   :  { %p1719_p7 = pnand %p1717_p6, %p1714_p5 }
 0x165   :  { %1722 = shalt.err (!%p1719_p7)
}
 0x166   :  { %1154 = dma.vmem_to_hbm [thread:$0]  %s1152_s1, 128, %s2139_s3, [#allocation3]  }
 0x167   :  { %1723 = dma.done.wait [#allocation3], 128  }
 0x168   :  { %1724 = vsyncadd [#allocation3], 4294967168 }
 0x169   :  { %1158 = vsyncpa [#allocation3], 1 }

</bundles_post_ra>
